<compile_context>
chip_gen: v6e
topology: v6e:2x2x1
jax: 0.10.0
libtpu: 0.0.40
codegen_flags: <defaults>
</compile_context>

<pallas_src>
import jax
import jax.numpy as jnp
from jax.experimental import pallas as pl
from jax.experimental.pallas import tpu as pltpu

MARGIN = 0.2  # PyTorch forward hard-codes margin = 0.2 (m_min / m_max unused)


def _choose_tile(b, batch_tile):
    """Pick a sublane-legal batch tile; aim for >=2 grid steps when b >= 16."""
    bt = max(8, (int(batch_tile) // 8) * 8)          # sublane rule: multiple of 8
    if b < 16:
        return b, 1                                  # single full-dim block (always legal)
    half = (((b + 1) // 2) + 7) // 8 * 8             # round_up(cdiv(b, 2), 8) <= b for b >= 16
    tb = max(8, min(bt, half))
    num_tiles = (b + tb - 1) // tb
    return tb, num_tiles


def spread_loss(class_caps_activations, labels, *, batch_tile=2048):
    """class_caps_activations: [b, B] float (any float dtype); labels: [b] int.
    Returns the scalar spread loss (f32)."""
    b, num_classes = class_caps_activations.shape
    assert labels.shape == (b,)
    # NOTE: out-of-range labels silently give a_t = 0 (all-zero mask) rather than
    # erroring like torch.gather; acceptable for this loss.

    tb, num_tiles = _choose_tile(b, batch_tile)
    ragged = (num_tiles * tb != b)

    lab2d = labels.astype(jnp.int32).reshape(b, 1)   # tiny; rides the sublane axis

    def kernel(act_ref, lab_ref, out_ref):
        act = act_ref[...]                                           # [tb, B]
        if act.dtype != jnp.float32:
            act = act.astype(jnp.float32)                            # f32 math in-kernel
        lab = lab_ref[...]                                           # [tb, 1] int32

        # One-hot via lane iota compare + select (no cast, no extra multiply).
        cls = jax.lax.broadcasted_iota(jnp.int32, act.shape, 1)      # class index per lane
        a_t = jnp.sum(jnp.where(cls == lab, act, 0.0),
                      axis=1, keepdims=True)                         # [tb, 1]

        diff = act - a_t + MARGIN                                    # margin - (a_t - act)
        sq = jnp.square(jnp.maximum(diff, 0.0))                      # [tb, B]

        if ragged:
            # Mask rows past the true batch in the (padded) last tile.  Use a
            # select (not a multiply) so OOB garbage / NaN cannot propagate.
            row = pl.program_id(0) * tb + jax.lax.broadcasted_iota(
                jnp.int32, (tb, 1), 0)
            sq = jnp.where(row < b, sq, 0.0)

        # Per-tile partial sum over the batch rows -> tiny lane-dense block.
        out_ref[...] = jnp.sum(sq, axis=0, keepdims=True)[None]      # (1, 1, B)

    itemsize = jnp.dtype(class_caps_activations.dtype).itemsize
    cost = pl.CostEstimate(
        flops=6 * b * num_classes,
        transcendentals=0,
        bytes_accessed=b * num_classes * itemsize + b * 4 + num_tiles * num_classes * 4,
    )

    partials = pl.pallas_call(
        kernel,
        out_shape=jax.ShapeDtypeStruct((num_tiles, 1, num_classes), jnp.float32),
        grid=(num_tiles,),
        in_specs=[
            pl.BlockSpec((tb, num_classes), lambda i: (i, 0)),       # activations tile
            pl.BlockSpec((tb, 1), lambda i: (i, 0)),                 # labels tile
        ],
        out_specs=pl.BlockSpec((1, 1, num_classes), lambda i: (i, 0, 0)),
        compiler_params=pltpu.CompilerParams(
            dimension_semantics=("parallel",)),                      # both TCs on v7x
        cost_estimate=cost,
    )(class_caps_activations, lab2d)

    # Tiny final reduction (num_tiles * num_classes floats) in plain JAX.
    total = jnp.sum(partials)
    return total / jnp.float32(b) - jnp.float32(MARGIN * MARGIN)


def spread_loss_from_one_hot(class_caps_activations, targets, *, batch_tile=2048):
    """Interface parity with the PyTorch module (one-hot targets)."""
    labels = jnp.argmax(targets, axis=-1).astype(jnp.int32)
    return spread_loss(class_caps_activations, labels, batch_tile=batch_tile)


def _reference(class_caps_activations, targets):
    act = class_caps_activations.astype(jnp.float32)
    tgt = targets.astype(jnp.float32)
    a_t = jnp.sum(act * tgt, axis=-1, keepdims=True)
    loss = jnp.maximum(MARGIN - (a_t - act), 0.0) ** 2
    return jnp.sum(loss) / act.shape[0] - MARGIN ** 2


if __name__ == "__main__":
    key = jax.random.PRNGKey(0)
    k1, k2 = jax.random.split(key)

    batch, num_classes = 2, 10
    # Capsule activations are in (0, 1); keep them strictly positive so the
    # reference PyTorch nonzero() path is shape-consistent.
    class_caps_activations = jax.random.uniform(
        k1, (batch, num_classes), dtype=jnp.float32, minval=0.05, maxval=0.95)
    labels = jax.random.randint(k2, (batch,), 0, num_classes)
    targets = jax.nn.one_hot(labels, num_classes, dtype=jnp.float32)

    loss = spread_loss(class_caps_activations, labels)
    jax.block_until_ready(loss)
    ref = _reference(class_caps_activations, targets)
    assert jnp.allclose(loss, ref, atol=1e-5, rtol=1e-5), (loss, ref)

    # One-hot interface path (module parity).
    loss_oh = spread_loss_from_one_hot(class_caps_activations, targets)
    jax.block_until_ready(loss_oh)
    assert jnp.allclose(loss_oh, ref, atol=1e-5, rtol=1e-5), (loss_oh, ref)

    # Tiled / ragged batch path (grid > 1, batch not a multiple of the tile).
    kb1, kb2 = jax.random.split(jax.random.PRNGKey(1))
    big_b = 1000
    big_act = jax.random.uniform(kb1, (big_b, num_classes), dtype=jnp.float32,
                                 minval=0.05, maxval=0.95)
    big_lab = jax.random.randint(kb2, (big_b,), 0, num_classes)
    big_tgt = jax.nn.one_hot(big_lab, num_classes, dtype=jnp.float32)
    big_loss = spread_loss(big_act, big_lab, batch_tile=256)
    jax.block_until_ready(big_loss)
    big_ref = _reference(big_act, big_tgt)
    assert jnp.allclose(big_loss, big_ref, atol=1e-4, rtol=1e-4), (big_loss, big_ref)

    # bf16 activations (native-dtype DMA, in-kernel f32 upcast) against the same
    # bf16 values upcast in the reference.
    bf_act = big_act.astype(jnp.bfloat16)
    bf_loss = spread_loss(bf_act, big_lab)
    jax.block_until_ready(bf_loss)
    bf_ref = _reference(bf_act.astype(jnp.float32), big_tgt)
    assert jnp.allclose(bf_loss, bf_ref, atol=1e-4, rtol=1e-4), (bf_loss, bf_ref)

    print("KERNEL_OK")
</pallas_src>

<mosaic_0001>
module attributes {stable_mosaic.version = 11 : i64} {
  func.func @kernel(%arg0: i32, %arg1: memref<2x10xf32, #tpu.memory_space<vmem>>, %arg2: memref<2x1xi32, #tpu.memory_space<vmem>>, %arg3: memref<1x1x10xf32, #tpu.memory_space<vmem>>) attributes {dimension_semantics = [#tpu.dimension_semantics<parallel>], iteration_bounds = array<i64: 1>, scalar_prefetch = 0 : i64, scratch_operands = 0 : i64, tpu.core_type = #tpu.core_type<tc>, window_params = [{transform_indices = @transform_0, window_bounds = array<i64: 2, 10>}, {transform_indices = @transform_1, window_bounds = array<i64: 2, 1>}, {transform_indices = @transform_2, window_bounds = array<i64: 1, 1, 10>}]} {
    %c0 = arith.constant 0 : index
    %c0_0 = arith.constant 0 : index
    %0 = vector.load %arg1[%c0, %c0_0] : memref<2x10xf32, #tpu.memory_space<vmem>>, vector<2x10xf32>
    %c0_1 = arith.constant 0 : index
    %c0_2 = arith.constant 0 : index
    %1 = vector.load %arg2[%c0_1, %c0_2] : memref<2x1xi32, #tpu.memory_space<vmem>>, vector<2x1xi32>
    %2 = tpu.iota {dimensions = array<i32: 1>} : vector<2x10xi32>
    %3 = vector.broadcast %1 : vector<2x1xi32> to vector<2x10xi32>
    %4 = arith.cmpi eq, %2, %3 : vector<2x10xi32>
    %cst = arith.constant 0.000000e+00 : f32
    %5 = vector.broadcast %cst : f32 to vector<2x10xf32>
    %6 = arith.select %4, %0, %5 : vector<2x10xi1>, vector<2x10xf32>
    %cst_3 = arith.constant dense<0.000000e+00> : vector<2xf32>
    %7 = vector.multi_reduction <add>, %6, %cst_3 [1] : vector<2x10xf32> to vector<2xf32>
    %8 = vector.shape_cast %7 : vector<2xf32> to vector<2x1xf32>
    %9 = vector.broadcast %8 : vector<2x1xf32> to vector<2x10xf32>
    %10 = arith.subf %0, %9 : vector<2x10xf32>
    %cst_4 = arith.constant 2.000000e-01 : f32
    %11 = vector.broadcast %cst_4 : f32 to vector<2x10xf32>
    %12 = arith.addf %10, %11 : vector<2x10xf32>
    %cst_5 = arith.constant 0.000000e+00 : f32
    %13 = vector.broadcast %cst_5 : f32 to vector<2x10xf32>
    %14 = arith.maximumf %12, %13 : vector<2x10xf32>
    %15 = arith.mulf %14, %14 : vector<2x10xf32>
    %cst_6 = arith.constant dense<0.000000e+00> : vector<10xf32>
    %16 = vector.multi_reduction <add>, %15, %cst_6 [0] : vector<2x10xf32> to vector<10xf32>
    %17 = vector.shape_cast %16 : vector<10xf32> to vector<1x10xf32>
    %18 = vector.shape_cast %17 : vector<1x10xf32> to vector<1x1x10xf32>
    %c0_7 = arith.constant 0 : index
    %c0_8 = arith.constant 0 : index
    %c0_9 = arith.constant 0 : index
    %19 = vector.load %arg3[%c0_7, %c0_8, %c0_9] : memref<1x1x10xf32, #tpu.memory_space<vmem>>, vector<1x1x10xf32>
    tpu.vector_store %arg3[%c0_7, %c0_8, %c0_9], %18 {strides = array<i32>} : memref<1x1x10xf32, #tpu.memory_space<vmem>>, vector<1x1x10xf32>,
    return
  }
  func.func @transform_0(%arg0: i32) -> (i32, i32) {
    %c0_i32 = arith.constant 0 : i32
    %c0_i32_0 = arith.constant 0 : i32
    return %arg0, %c0_i32 : i32, i32
  }
  func.func @transform_1(%arg0: i32) -> (i32, i32) {
    %c0_i32 = arith.constant 0 : i32
    %c0_i32_0 = arith.constant 0 : i32
    return %arg0, %c0_i32 : i32, i32
  }
  func.func @transform_2(%arg0: i32) -> (i32, i32, i32) {
    %c0_i32 = arith.constant 0 : i32
    %c0_i32_0 = arith.constant 0 : i32
    %c0_i32_1 = arith.constant 0 : i32
    return %arg0, %c0_i32, %c0_i32_0 : i32, i32, i32
  }
}

</mosaic_0001>

<bundles_post_ra>
// kernel: tpu_custom_call.1
= control target key start
LH: loop header
LB: loop body
LE: loop exit
PB: predicated region body
PF: predicated region fallthrough
CT: control target
= control target key end

     0   :  { %v77_v1 = vmov 0   ;;  %s103_s0 = inlined_call_operand.vmem [shape: f32[2,10], index: 0, kind: input, shape index: {}]   ;;  %s104_s1 = inlined_call_operand.vmem [shape: s32[2,1], index: 1, kind: input, shape index: {}]   ;;  %s105_s2 = inlined_call_operand.hbm [shape: f32[1,1,10], index: 2, kind: output, shape index: {}]  }
   0x1   :  { %v13_v0 = vld [vmem:[%s104_s1] sm:$0x3]  ;;  %54 = vset.pattern.permute.xlu0 %v77_v1 }
   0x2   :  { %7 = vsyncpa [#allocation3], 0  ;;  %17 = vperm.xlu0 %54, %v13_v0   ;;  %v14_v2 = vlaneseq  ;;  %v12_v4 = vld [vmem:[%s103_s0] sm:$0x3]  ;;  %vm21_vm0 = vcmask 74752   ;;  %s78_s1 = smov [#allocation2]  }
   0x3   :  { %s44_s13 = sshll.u32 %s78_s1, 4  ;;  %vm36_vm2 = vcmask 73728   ;;  %s45_s13 = int_to_ptr.vmem [resolvable:$true] %s44_s13 }
   0x4   :  { %v15_v3 = vand.u32 127, %v14_v2  ;;  %s55_s0 = scalar_lea.vmem %s45_s13, 16  ;;  %s59_s14 = scalar_lea.vmem %s45_s13, 32 }
   0x5   :  { %p56_p0 = scmp.ne.s32.totalorder %s45_s13, %s55_s0  ;;  %p60_p1 = scmp.lt.s32.totalorder %s45_s13, %s45_s13 }
   0x6   :  { %p61_p2 = scmp.lt.s32.totalorder %s59_s14, %s55_s0 }
   0x8   :  { %p62_p3 = por %p61_p2, %p60_p1 }
   0xa   :  { %p63_p4 = pnand %p62_p3, %p56_p0 }
  0x7d   :  { %v18_v5 = vpop.permute.xlu0 %17 }
  0x7e   :  { %vm19_vm1 = vcmp.eq.s32.totalorder %v15_v3, %v18_v5 }
  0x7f   :  { %v20_v6 = vsel %vm19_vm1, %v12_v4, 0.0 }
  0x80   :  { %v22_v7 = vsel %vm21_vm0, %v20_v6, 0.0 }
  0x81   :  { %23 = vadd.xlane.f32.xlu0 %v22_v7 }
 0x10a   :  { %v24_v8 = vpop.xlane.xlu0 %23 }
 0x10b   :  { %v25_v9 = vsub.f32 %v12_v4, %v24_v8 }
 0x10d   :  { %v26_v10 = vadd.f32 0.2, %v25_v9 }
 0x10f   :  { %v27_v11 = vmax.f32 %v26_v10, 0.0 }
 0x111   :  { %v28_v12 = vmul.f32 %v27_v11, %v27_v11 }
 0x113   :  { %v29_v13 = vsel %vm21_vm0, %v28_v12, 0.0 }
 0x114   :  { %v30_v14 = vrot.slane %v29_v13, 4 }
 0x116   :  { %v31_v15 = vadd.f32 %v30_v14, %v29_v13 }
 0x118   :  { %v32_v16 = vrot.slane %v31_v15, 2 }
 0x11a   :  { %v33_v17 = vadd.f32 %v32_v16, %v31_v15 }
 0x11c   :  { %v34_v18 = vrot.slane %v33_v17, 1 }
 0x11e   :  { %v35_v19 = vadd.f32 %v34_v18, %v33_v17 }
 0x120   :  { %37 = vst.msk [vmem:[#allocation2] sm:$0x1] %vm36_vm2, %v35_v19 }
 0x121   :  { %66 = shalt.err (!%p63_p4)
}
 0x122   :  { %47 = dma.vmem_to_hbm [thread:$0]  %s45_s13, 16, %s105_s2, [#allocation3]  }
 0x123   :  { %75 = dma.done.wait [#allocation3], 16  }
 0x124   :  { %76 = vsyncadd [#allocation3], 4294967280 }
 0x125   :  { %51 = vsyncpa [#allocation3], 1 }

</bundles_post_ra>
